<compile_context>
chip_gen: v7x
topology: tpu7x:2x2x1
jax: 0.10.0
libtpu: 0.0.40
codegen_flags: <defaults>
</compile_context>

<pallas_src>
import functools

import jax
import jax.numpy as jnp
from jax.experimental import pallas as pl
from jax.experimental.pallas import tpu as pltpu


def _leaky_relu(x, slope=0.2):
    return jnp.where(x > 0, x, slope * x)


def residual_kernel(p_ref, w1_ref, w2_ref, o_ref, *, C):
    # p_ref : (9*C, NBLK)  im2col slab of the zero-padded RAW input, rows ordered (ky, kx, c)
    # w1_ref: (R, 9*C)     3x3 conv weights, columns ordered (ky, kx, c)
    # w2_ref: (Cout, R)    1x1 conv weights
    # o_ref : (Cout, NBLK)
    h1 = _leaky_relu(p_ref[...])                                          # LeakyReLU(0.2) on slab
    a = jnp.dot(w1_ref[...], h1, preferred_element_type=jnp.float32)      # (R, NBLK)   3x3 conv (MXU)
    h2 = _leaky_relu(a).astype(w2_ref.dtype)                              # LeakyReLU(0.2)
    y = jnp.dot(w2_ref[...], h2, preferred_element_type=jnp.float32)      # (Cout, NBLK) 1x1 conv (MXU)
    # Skip path: the center tap (ky=kx=1) of the raw slab is exactly x.  Rows [4C, 5C) are
    # contiguous; with C a multiple of the sublane tile (8 f32 / 16 bf16) the read is an
    # aligned vld -- no stride-9 sublane gather, no second HBM input stream.
    x = p_ref[pl.ds(4 * C, C), :]
    o_ref[...] = (x.astype(jnp.float32) + y).astype(o_ref.dtype)          # residual add, lane-dense store


def _pick_lane_block(n_lanes, bytes_per_lane, vmem_budget_bytes):
    """Largest 128-lane-multiple divisor of n_lanes whose per-step footprint fits the
    budget; prefers >=2 blocks of >=512 lanes so both v7x TensorCores get fed."""
    assert n_lanes % 128 == 0
    groups = n_lanes // 128
    max_groups = max(1, vmem_budget_bytes // (bytes_per_lane * 128))
    divisors = [d for d in range(1, groups + 1) if groups % d == 0 and d <= max_groups]
    multi = [d for d in divisors if groups // d >= 2 and d >= 4]   # >=2 blocks, each >=512 lanes
    return 128 * (max(multi) if multi else max(divisors))


def residual_forward(x_nchw, w1_oihw, w2_oihw, *, compute_dtype=jnp.float32):
    """x_nchw: (B, C, H, W). w1_oihw: (R, C, 3, 3) OIHW. w2_oihw: (Cout, R, 1, 1) OIHW."""
    B, C, H, W = x_nchw.shape
    R = w1_oihw.shape[0]
    Cout = w2_oihw.shape[0]
    assert Cout == C, "Residual add requires num_hiddens == in_channels"
    assert w1_oihw.shape == (R, C, 3, 3) and w2_oihw.shape == (Cout, R, 1, 1)

    N = B * H * W
    assert N % 128 == 0, "B*H*W must be a multiple of 128 for lane-dense blocks"

    # ---- wrapper-side layout plumbing (shifted copies only, no arithmetic) ----
    xc = x_nchw.astype(compute_dtype)
    x_pad = jnp.pad(xc, ((0, 0), (0, 0), (1, 1), (1, 1)))                  # (B, C, H+2, W+2)
    taps = [x_pad[:, :, dy:dy + H, dx:dx + W]                              # 9 x (B, C, H, W)
            for dy in range(3) for dx in range(3)]                         # tap = 3*dy + dx
    patches = jnp.stack(taps, axis=0)                                      # (9, B, C, H, W)
    # rows = (tap, c): center tap (tap == 4) occupies rows [4C, 5C) and equals raw x.
    patches = jnp.transpose(patches, (0, 2, 1, 3, 4)).reshape(9 * C, N)    # (9C, N), cols = (b, y, x)

    # w1 OIHW -> (R, 9C) with column order (ky, kx, c), matching the slab row order.
    w1_2d = jnp.transpose(w1_oihw, (0, 2, 3, 1)).reshape(R, 9 * C).astype(compute_dtype)
    w2_2d = w2_oihw[:, :, 0, 0].astype(compute_dtype)                      # (Cout, R)

    # ---- lane-block sizing against a generation-safe VMEM budget ----
    itm = jnp.dtype(compute_dtype).itemsize
    bytes_per_lane = (2 * 9 * C * itm          # double-buffered slab input stream
                      + 2 * Cout * itm         # double-buffered output stream
                      + 9 * C * itm            # h1 working copy
                      + (R + Cout) * 4)        # f32 matmul results (a, y)
    VMEM_BUDGET = 24 << 20                     # conservative vs v7x's 64 MiB physical VMEM
    NBLK = _pick_lane_block(N, bytes_per_lane, VMEM_BUDGET)
    n_blocks = N // NBLK

    kernel = functools.partial(residual_kernel, C=C)
    out_flat = pl.pallas_call(
        kernel,
        out_shape=jax.ShapeDtypeStruct((Cout, N), x_nchw.dtype),
        grid=(n_blocks,),
        in_specs=[
            pl.BlockSpec((9 * C, NBLK), lambda i: (0, i)),   # patch slab block (also carries the skip)
            pl.BlockSpec((R, 9 * C), lambda i: (0, 0)),      # weights resident across steps
            pl.BlockSpec((Cout, R), lambda i: (0, 0)),
        ],
        out_specs=pl.BlockSpec((Cout, NBLK), lambda i: (0, i)),
        compiler_params=pltpu.CompilerParams(
            dimension_semantics=("parallel",),               # shards lane blocks across v7x's 2 TCs
            vmem_limit_bytes=48 << 20,                       # > 16/32 MiB scoped defaults, < v7x 64 MiB
        ),
    )(patches, w1_2d, w2_2d)

    # (Cout, B*H*W) -> (B, Cout, H, W)
    return jnp.transpose(out_flat.reshape(Cout, B, H, W), (1, 0, 2, 3))


def _reference(x_nchw, w1_oihw, w2_oihw):
    # Plain-JAX reference of the PyTorch forward (x + case(x)), NCHW throughout.
    h = _leaky_relu(x_nchw)
    h = jax.lax.conv_general_dilated(
        h, w1_oihw, window_strides=(1, 1), padding=((1, 1), (1, 1)),
        dimension_numbers=("NCHW", "OIHW", "NCHW"))
    h = _leaky_relu(h)
    h = jax.lax.conv_general_dilated(
        h, w2_oihw, window_strides=(1, 1), padding="VALID",
        dimension_numbers=("NCHW", "OIHW", "NCHW"))
    return x_nchw + h


if __name__ == "__main__":
    # Small shapes consistent with the module (in_channels == num_hiddens, needed for x += case(x)).
    B, C, H, W = 2, 8, 16, 16          # in_channels = num_hiddens = 8
    R = 16                             # num_residual_hiddens

    key = jax.random.PRNGKey(0)
    kx, k1, k2 = jax.random.split(key, 3)
    x = jax.random.normal(kx, (B, C, H, W), dtype=jnp.float32)
    w1 = jax.random.normal(k1, (R, C, 3, 3), dtype=jnp.float32) * 0.1     # PyTorch OIHW layout
    w2 = jax.random.normal(k2, (C, R, 1, 1), dtype=jnp.float32) * 0.1

    ref = jax.block_until_ready(_reference(x, w1, w2))

    # f32 path (exact; also the right setting on v5e, which has no bf16 VPU).
    out = jax.block_until_ready(residual_forward(x, w1, w2))
    assert out.shape == (B, C, H, W)
    assert jnp.allclose(out, ref, atol=1e-4, rtol=1e-4), "f32 kernel mismatch vs JAX reference"

    # bf16-slab path (halves HBM traffic / VMEM footprint of the dominant 9C-row stream;
    # recommended on v6e/v7x).  Looser tolerance due to bf16 quantization.
    out_bf16 = jax.block_until_ready(residual_forward(x, w1, w2, compute_dtype=jnp.bfloat16))
    assert out_bf16.shape == (B, C, H, W)
    assert jnp.allclose(out_bf16, ref, atol=6e-2, rtol=6e-2), "bf16 kernel mismatch vs JAX reference"

    print("KERNEL_OK")
</pallas_src>

<mosaic_0001>
module attributes {stable_mosaic.version = 11 : i64} {
  func.func @residual_kernel(%arg0: i32, %arg1: memref<72x512xf32, #tpu.memory_space<vmem>>, %arg2: memref<16x72xf32, #tpu.memory_space<vmem>>, %arg3: memref<8x16xf32, #tpu.memory_space<vmem>>, %arg4: memref<8x512xf32, #tpu.memory_space<vmem>>) attributes {dimension_semantics = [#tpu.dimension_semantics<parallel>], iteration_bounds = array<i64: 1>, scalar_prefetch = 0 : i64, scratch_operands = 0 : i64, tpu.core_type = #tpu.core_type<tc>, window_params = [{transform_indices = @transform_0, window_bounds = array<i64: 72, 512>}, {pipeline_mode = #tpu.pipeline_mode<synchronous>, transform_indices = @transform_1, window_bounds = array<i64: 16, 72>}, {pipeline_mode = #tpu.pipeline_mode<synchronous>, transform_indices = @transform_2, window_bounds = array<i64: 8, 16>}, {transform_indices = @transform_3, window_bounds = array<i64: 8, 512>}]} {
    %c0 = arith.constant 0 : index
    %c0_0 = arith.constant 0 : index
    %0 = vector.load %arg1[%c0, %c0_0] : memref<72x512xf32, #tpu.memory_space<vmem>>, vector<72x512xf32>
    %cst = arith.constant 0.000000e+00 : f32
    %1 = vector.broadcast %cst : f32 to vector<72x512xf32>
    %2 = arith.cmpf ogt, %0, %1 : vector<72x512xf32>
    %cst_1 = arith.constant 2.000000e-01 : f32
    %3 = vector.broadcast %cst_1 : f32 to vector<72x512xf32>
    %4 = arith.mulf %3, %0 : vector<72x512xf32>
    %5 = arith.select %2, %0, %4 : vector<72x512xi1>, vector<72x512xf32>
    %c0_2 = arith.constant 0 : index
    %c0_3 = arith.constant 0 : index
    %6 = vector.load %arg2[%c0_2, %c0_3] : memref<16x72xf32, #tpu.memory_space<vmem>>, vector<16x72xf32>
    %cst_4 = arith.constant dense<0.000000e+00> : vector<16x512xf32>
    %7 = tpu.matmul %6, %5, %cst_4 {dimension_numbers = #tpu.dot_dimension_numbers<[1], [0], [0], [1], [0, 0, 1, 1], [], []>} : vector<16x72xf32>, vector<72x512xf32>, vector<16x512xf32> -> vector<16x512xf32>
    %cst_5 = arith.constant 0.000000e+00 : f32
    %8 = vector.broadcast %cst_5 : f32 to vector<16x512xf32>
    %9 = arith.cmpf ogt, %7, %8 : vector<16x512xf32>
    %cst_6 = arith.constant 2.000000e-01 : f32
    %10 = vector.broadcast %cst_6 : f32 to vector<16x512xf32>
    %11 = arith.mulf %10, %7 : vector<16x512xf32>
    %12 = arith.select %9, %7, %11 : vector<16x512xi1>, vector<16x512xf32>
    %c0_7 = arith.constant 0 : index
    %c0_8 = arith.constant 0 : index
    %13 = vector.load %arg3[%c0_7, %c0_8] : memref<8x16xf32, #tpu.memory_space<vmem>>, vector<8x16xf32>
    %cst_9 = arith.constant dense<0.000000e+00> : vector<8x512xf32>
    %14 = tpu.matmul %13, %12, %cst_9 {dimension_numbers = #tpu.dot_dimension_numbers<[1], [0], [0], [1], [0, 0, 1, 1], [], []>} : vector<8x16xf32>, vector<16x512xf32>, vector<8x512xf32> -> vector<8x512xf32>
    %c32 = arith.constant 32 : index
    %c0_10 = arith.constant 0 : index
    %15 = vector.load %arg1[%c32, %c0_10] : memref<72x512xf32, #tpu.memory_space<vmem>>, vector<8x512xf32>
    %16 = arith.addf %15, %14 : vector<8x512xf32>
    %c0_11 = arith.constant 0 : index
    %c0_12 = arith.constant 0 : index
    %17 = vector.load %arg4[%c0_11, %c0_12] : memref<8x512xf32, #tpu.memory_space<vmem>>, vector<8x512xf32>
    tpu.vector_store %arg4[%c0_11, %c0_12], %16 {strides = array<i32>} : memref<8x512xf32, #tpu.memory_space<vmem>>, vector<8x512xf32>,
    return
  }
  func.func @transform_0(%arg0: i32) -> (i32, i32) {
    %c0_i32 = arith.constant 0 : i32
    %c0_i32_0 = arith.constant 0 : i32
    return %c0_i32, %arg0 : i32, i32
  }
  func.func @transform_1(%arg0: i32) -> (i32, i32) {
    %c0_i32 = arith.constant 0 : i32
    %c0_i32_0 = arith.constant 0 : i32
    %c0_i32_1 = arith.constant 0 : i32
    return %c0_i32, %c0_i32_0 : i32, i32
  }
  func.func @transform_2(%arg0: i32) -> (i32, i32) {
    %c0_i32 = arith.constant 0 : i32
    %c0_i32_0 = arith.constant 0 : i32
    %c0_i32_1 = arith.constant 0 : i32
    return %c0_i32, %c0_i32_0 : i32, i32
  }
  func.func @transform_3(%arg0: i32) -> (i32, i32) {
    %c0_i32 = arith.constant 0 : i32
    %c0_i32_0 = arith.constant 0 : i32
    return %c0_i32, %arg0 : i32, i32
  }
}

</mosaic_0001>

<bundles_post_ra>
// kernel: tpu_custom_call.1
= control target key start
LH: loop header
LB: loop body
LE: loop exit
PB: predicated region body
PF: predicated region fallthrough
CT: control target
= control target key end

     0   :  { %8 = vsyncpa [#allocation3], 0  ;;  %s829_s0 = inlined_call_operand.hbm [shape: f32[72,512], index: 0, kind: input, shape index: {}]   ;;  %s830_s1 = inlined_call_operand.hbm [shape: f32[16,72], index: 1, kind: input, shape index: {}]   ;;  %s831_s2 = inlined_call_operand.hbm [shape: f32[8,16], index: 2, kind: input, shape index: {}]   ;;  %s832_s3 = inlined_call_operand.hbm [shape: f32[8,512], index: 3, kind: output, shape index: {}]  }
   0x1   :  { %9 = vsyncpa [#allocation6], 0 }
   0x2   :  { %10 = vsyncpa [#allocation4], 0  ;;  %s709_s12 = smov [#allocation5]   ;;  %s615_s16 = scalar_lea.hbm %s830_s1, 256 }
   0x3   :  { %s28_s13 = sshll.u32 %s709_s12, 4  ;;  %p616_p0 = scmp.ne.s32.totalorder %s830_s1, %s615_s16  ;;  %s29_s13 = int_to_ptr.vmem [resolvable:$true] %s28_s13 }
   0x4   :  { %p619_p1 = scmp.lt.u32.totalorder %s615_s16, %s830_s1 }
   0x6   :  { %p621_p2 = pnand %p619_p1, %p616_p0 }
   0x8   :  { %624 = shalt.err (!%p621_p2)
}
   0x9   :  { %s625_s21 = scalar_lea.vmem %s29_s13, 256  ;;  %p630_p4 = scmp.lt.s32.totalorder %s29_s13, %s29_s13 }
   0xa   :  { %p626_p3 = scmp.ne.s32.totalorder %s29_s13, %s625_s21  ;;  %p631_p5 = scmp.lt.s32.totalorder %s625_s21, %s625_s21 }
   0xc   :  { %p632_p6 = por %p631_p5, %p630_p4 }
   0xe   :  { %p633_p7 = pnand %p632_p6, %p626_p3 }
  0x10   :  { %636 = shalt.err (!%p633_p7)
}
  0x11   :  { %s710_s22 = smov 128   ;;  %s711_s23 = smov 8  }
  0x12   :  { %34 = dma.hbm_to_vmem [thread:$0]  %s830_s1, 256, %s29_s13, [#allocation6], %s710_s22, %s710_s22, %s711_s23  }
  0x13   :  { %s712_s26 = smov [#allocation2]   ;;  %s637_s30 = scalar_lea.hbm %s829_s0, 4608 }
  0x14   :  { %s16_s27 = sshll.u32 %s712_s26, 4  ;;  %p638_p8 = scmp.ne.s32.totalorder %s829_s0, %s637_s30  ;;  %s17_s27 = int_to_ptr.vmem [resolvable:$true] %s16_s27 }
  0x15   :  { %p641_p9 = scmp.lt.u32.totalorder %s637_s30, %s829_s0 }
  0x17   :  { %p643_p10 = pnand %p641_p9, %p638_p8 }
  0x19   :  { %646 = shalt.err (!%p643_p10)
}
  0x1a   :  { %s647_s8 = scalar_lea.vmem %s17_s27, 4608  ;;  %p652_p12 = scmp.lt.s32.totalorder %s17_s27, %s17_s27 }
  0x1b   :  { %p648_p11 = scmp.ne.s32.totalorder %s17_s27, %s647_s8  ;;  %p653_p13 = scmp.lt.s32.totalorder %s647_s8, %s647_s8 }
  0x1d   :  { %p654_p0 = por %p653_p13, %p652_p12 }
  0x1f   :  { %p655_p1 = pnand %p654_p0, %p648_p11 }
  0x21   :  { %658 = shalt.err (!%p655_p1)
}
  0x22   :  { %s713_s1 = smov 512   ;;  %s714_s9 = smov 32  }
  0x23   :  { %22 = dma.hbm_to_vmem [thread:$0]  %s829_s0, 4608, %s17_s27, [#allocation3], %s713_s1, %s713_s1, %s714_s9  }
  0x24   :  { %s715_s12 = smov [#allocation7]   ;;  %s659_s16 = scalar_lea.hbm %s831_s2, 128 }
  0x25   :  { %s41_s13 = sshll.u32 %s715_s12, 4  ;;  %p660_p2 = scmp.ne.s32.totalorder %s831_s2, %s659_s16  ;;  %s42_s13 = int_to_ptr.vmem [resolvable:$true] %s41_s13 }
  0x26   :  { %p663_p3 = scmp.lt.u32.totalorder %s659_s16, %s831_s2 }
  0x28   :  { %p665_p4 = pnand %p663_p3, %p660_p2 }
  0x2a   :  { %668 = shalt.err (!%p665_p4)
}
  0x2b   :  { %s669_s21 = scalar_lea.vmem %s42_s13, 128  ;;  %p674_p6 = scmp.lt.s32.totalorder %s42_s13, %s42_s13 }
  0x2c   :  { %p670_p5 = scmp.ne.s32.totalorder %s42_s13, %s669_s21  ;;  %p675_p7 = scmp.lt.s32.totalorder %s669_s21, %s669_s21 }
  0x2e   :  { %p676_p8 = por %p675_p7, %p674_p6 }
  0x30   :  { %p677_p9 = pnand %p676_p8, %p670_p5 }
  0x32   :  { %680 = shalt.err (!%p677_p9)
}
  0x33   :  { %44 = dma.hbm_to_vmem [thread:$0]  %s831_s2, 128, %s42_s13, [#allocation6]  }
  0x34   :  { %703 = dma.done.wait [#allocation3], 4608  }
  0x35   :  { %704 = vsyncadd [#allocation3], 4294962688 }
  0x36   :  { %705 = dma.done.wait [#allocation6], 384  }
  0x37   :  { %706 = vsyncadd [#allocation6], 4294966912  ;;  %v716_v0 = vmov 0.0   ;;  %v55_v1 = vld [vmem:[#allocation2 + $0x8] sm:$0xff]  ;;  %v57_v3 = vld [vmem:[#allocation2 + $0x18] sm:$0xff]  ;;  %s717_s2 = smov [#allocation8]  }
  0x38   :  { %271 = vmatprep.mubr.f32.mxu0 %v716_v0  ;;  %348 = vmatprep.mubr.f32.mxu1 %v716_v0  ;;  %v59_v2 = vld [vmem:[#allocation2 + $0x28] sm:$0xff]  ;;  %vm91_vm0 = vcmp.gt.f32.partialorder %v55_v1, 0.0  ;;  %v127_v4 = vmul.f32 0.2, %v55_v1  ;;  %v61_v6 = vld [vmem:[#allocation2 + $0x38] sm:$0xff]  ;;  %vm93_vm2 = vcmp.gt.f32.partialorder %v57_v3, 0.0 }
  0x39   :  { %vm95_vm1 = vcmp.gt.f32.partialorder %v59_v2, 0.0  ;;  %v131_v5 = vmul.f32 0.2, %v59_v2  ;;  %v129_v7 = vmul.f32 0.2, %v57_v3  ;;  %v54_v8 = vld [vmem:[#allocation2] sm:$0xff] }
  0x3a   :  { %v58_v9 = vld [vmem:[#allocation2 + $0x20] sm:$0xff]  ;;  %v163_v10 = vsel %vm91_vm0, %v55_v1, %v127_v4  ;;  %vm97_vm3 = vcmp.gt.f32.partialorder %v61_v6, 0.0  ;;  %v133_v12 = vmul.f32 0.2, %v61_v6  ;;  %v56_v13 = vld [vmem:[#allocation2 + $0x10] sm:$0xff]  ;;  %vm90_vm4 = vcmp.gt.f32.partialorder %v54_v8, 0.0 }
  0x3b   :  { %v167_v11 = vsel %vm95_vm1, %v59_v2, %v131_v5  ;;  %v60_v14 = vld [vmem:[#allocation2 + $0x30] sm:$0xff]  ;;  %v165_v16 = vsel %vm93_vm2, %v57_v3, %v129_v7  ;;  %vm94_vm5 = vcmp.gt.f32.partialorder %v58_v9, 0.0  ;;  %v63_v17 = vld [vmem:[#allocation2 + $0x48] sm:$0xff]  ;;  %v126_v20 = vmul.f32 0.2, %v54_v8  ;;  %v65_v22 = vld [vmem:[#allocation2 + $0x58] sm:$0xff] }
  0x3c   :  { %v566_v15 = vpack.c.bf16 %v167_v11, %v163_v10  ;;  %v67_v18 = vld [vmem:[#allocation2 + $0x68] sm:$0xff]  ;;  %v169_v19 = vsel %vm97_vm3, %v61_v6, %v133_v12  ;;  %v130_v21 = vmul.f32 0.2, %v58_v9  ;;  %vm92_vm6 = vcmp.gt.f32.partialorder %v56_v13, 0.0  ;;  %v69_v26 = vld [vmem:[#allocation2 + $0x78] sm:$0xff]  ;;  %v62_v29 = vld [vmem:[#allocation2 + $0x40] sm:$0xff] }
  0x3d   :  { %v582_v23 = vpack.c.bf16 %v169_v19, %v165_v16  ;;  %vm96_vm7 = vcmp.gt.f32.partialorder %v60_v14, 0.0  ;;  %v128_v24 = vmul.f32 0.2, %v56_v13  ;;  %v132_v25 = vmul.f32 0.2, %v60_v14  ;;  %v66_v34 = vld [vmem:[#allocation2 + $0x60] sm:$0xff] }
  0x3e   :  { %567 = vmatprep.subr.bf16.mxu0 %v566_v15  ;;  %v162_v27 = vsel %vm90_vm4, %v54_v8, %v126_v20  ;;  %v166_v28 = vsel %vm94_vm5, %v58_v9, %v130_v21  ;;  %vm99_vm8 = vcmp.gt.f32.partialorder %v63_v17, 0.0  ;;  %vm103_vm9 = vcmp.gt.f32.partialorder %v67_v18, 0.0  ;;  %v64_v37 = vld [vmem:[#allocation2 + $0x50] sm:$0xff]  ;;  %v777_v45 = vld [vmem:[#allocation2 + $0x88] sm:$0xff]  ;;  %v781_v50 = vld [vmem:[#allocation2 + $0x98] sm:$0xff]  ;;  %s550_s23 = sshll.u32 %s717_s2, 4  ;;  %s551_s23 = int_to_ptr.vmem [resolvable:$true] %s550_s23 }
  0x3f   :  { %583 = vmatprep.subr.bf16.mxu1 %v582_v23  ;;  %v568_v30 = vpack.c.bf16 %v166_v28, %v162_v27  ;;  %v164_v31 = vsel %vm92_vm6, %v56_v13, %v128_v24  ;;  %v168_v32 = vsel %vm96_vm7, %v60_v14, %v132_v25  ;;  %v135_v33 = vmul.f32 0.2, %v63_v17  ;;  %v68_v41 = vld [vmem:[#allocation2 + $0x70] sm:$0xff]  ;;  %v75_v49 = vld [vmem:[#allocation2 + $0xa8] sm:$0xff]  ;;  %v77_v54 = vld [vmem:[#allocation2 + $0xb8] sm:$0xff]  ;;  %s681_s24 = scalar_lea.vmem %s551_s23, 512  ;;  %p686_p11 = scmp.lt.s32.totalorder %s551_s23, %s551_s23 }
  0x40   :  { %v584_v35 = vpack.c.bf16 %v168_v32, %v164_v31  ;;  %v139_v36 = vmul.f32 0.2, %v67_v18  ;;  %vm101_vm10 = vcmp.gt.f32.partialorder %v65_v22, 0.0  ;;  %vm105_vm11 = vcmp.gt.f32.partialorder %v69_v26, 0.0  ;;  %v783_v55 = vld [vmem:[#allocation2 + $0x80] sm:$0xff]  ;;  %v791_v2 = vld [vmem:[#allocation2 + $0x90] sm:$0xff]  ;;  %p682_p10 = scmp.ne.s32.totalorder %s551_s23, %s681_s24  ;;  %p687_p12 = scmp.lt.s32.totalorder %s681_s24, %s681_s24 }
  0x41   :  { %569 = vmatpush1.bf16.msra.mxu0 %v568_v30  ;;  %v171_v38 = vsel %vm99_vm8, %v63_v17, %v135_v33  ;;  %v137_v39 = vmul.f32 0.2, %v65_v22  ;;  %v141_v40 = vmul.f32 0.2, %v69_v26  ;;  %vm98_vm12 = vcmp.gt.f32.partialorder %v62_v29, 0.0  ;;  %v74_v59 = vld [vmem:[#allocation2 + $0xa0] sm:$0xff] }
  0x42   :  { %585 = vmatpush1.bf16.msra.mxu1 %v584_v35  ;;  %v175_v42 = vsel %vm103_vm9, %v67_v18, %v139_v36  ;;  %vm102_vm13 = vcmp.gt.f32.partialorder %v66_v34, 0.0  ;;  %v134_v43 = vmul.f32 0.2, %v62_v29  ;;  %v138_v44 = vmul.f32 0.2, %v66_v34  ;;  %v76_v7 = vld [vmem:[#allocation2 + $0xb0] sm:$0xff]  ;;  %p688_p13 = por %p687_p12, %p686_p11 }
  0x43   :  { %v570_v46 = vpack.c.bf16 %v175_v42, %v171_v38  ;;  %v173_v47 = vsel %vm101_vm10, %v65_v22, %v137_v39  ;;  %v177_v48 = vsel %vm105_vm11, %v69_v26, %v141_v40  ;;  %vm100_vm14 = vcmp.gt.f32.partialorder %v64_v37, 0.0  ;;  %v79_v10 = vld [vmem:[#allocation2 + $0xc8] sm:$0xff]  ;;  %v81_v15 = vld [vmem:[#allocation2 + $0xd8] sm:$0xff]  ;;  %v78_v22 = vld [vmem:[#allocation2 + $0xc0] sm:$0xff] }
  0x44   :  { %v586_v51 = vpack.c.bf16 %v177_v48, %v173_v47  ;;  %v170_v52 = vsel %vm98_vm12, %v62_v29, %v134_v43  ;;  %v174_v53 = vsel %vm102_vm13, %v66_v34, %v138_v44  ;;  %vm104_vm15 = vcmp.gt.f32.partialorder %v68_v41, 0.0  ;;  %v83_v11 = vld [vmem:[#allocation2 + $0xe8] sm:$0xff]  ;;  %v85_v19 = vld [vmem:[#allocation2 + $0xf8] sm:$0xff]  ;;  %v82_v27 = vld [vmem:[#allocation2 + $0xe0] sm:$0xff]  ;;  %p689_p0 = pnand %p688_p13, %p682_p10 }
  0x45   :  { %571 = vmatprep.subr.bf16.mxu0 %v570_v46  ;;  %v572_v56 = vpack.c.bf16 %v174_v53, %v170_v52  ;;  %v136_v57 = vmul.f32 0.2, %v64_v37  ;;  %v140_v58 = vmul.f32 0.2, %v68_v41  ;;  %vm107_vm0 = vcmp.gt.f32.partialorder %v777_v45, 0.0  ;;  %v80_v30 = vld [vmem:[#allocation2 + $0xd0] sm:$0xff] }
  0x46   :  { %587 = vmatprep.subr.bf16.mxu1 %v586_v51  ;;  %vm111_vm1 = vcmp.gt.f32.partialorder %v75_v49, 0.0  ;;  %v143_v60 = vmul.f32 0.2, %v777_v45  ;;  %v147_v61 = vmul.f32 0.2, %v75_v49  ;;  %vm109_vm2 = vcmp.gt.f32.partialorder %v781_v50, 0.0 }
  0x47   :  { %573 = vmatpush1.bf16.msra.mxu0 %v572_v56  ;;  %v172_v62 = vsel %vm100_vm14, %v64_v37, %v136_v57  ;;  %v176_v63 = vsel %vm104_vm15, %v68_v41, %v140_v58  ;;  %vm113_vm3 = vcmp.gt.f32.partialorder %v77_v54, 0.0  ;;  %v145_v1 = vmul.f32 0.2, %v781_v50  ;;  %v84_v34 = vld [vmem:[#allocation2 + $0xf0] sm:$0xff]  ;;  %v87_v38 = vld [vmem:[#allocation2 + $0x108] sm:$0xff]  ;;  %v89_v42 = vld [vmem:[#allocation2 + $0x118] sm:$0xff] }
  0x48   :  { %v588_v3 = vpack.c.bf16 %v176_v63, %v172_v62  ;;  %v179_v4 = vsel %vm107_vm0, %v777_v45, %v143_v60  ;;  %v183_v5 = vsel %vm111_vm1, %v75_v49, %v147_v61  ;;  %v149_v6 = vmul.f32 0.2, %v77_v54  ;;  %v86_v43 = vld [vmem:[#allocation2 + $0x100] sm:$0xff]  ;;  %v88_v48 = vld [vmem:[#allocation2 + $0x110] sm:$0xff] }
  0x49   :  { %v574_v8 = vpack.c.bf16 %v183_v5, %v179_v4  ;;  %v181_v9 = vsel %vm109_vm2, %v781_v50, %v145_v1  ;;  %vm106_vm4 = vcmp.gt.f32.partialorder %v783_v55, 0.0  ;;  %vm110_vm5 = vcmp.gt.f32.partialorder %v74_v59, 0.0  ;;  %v198_v1 = vld [vmem:[#allocation5] sm:$0xff]  ;;  %v199_v4 = vld [vmem:[#allocation5 + $0x8] sm:$0xff] }
  0x4a   :  { %589 = vmatpush1.bf16.msra.mxu1 %v588_v3  ;;  %v185_v12 = vsel %vm113_vm3, %v77_v54, %v149_v6  ;;  %v142_v13 = vmul.f32 0.2, %v783_v55  ;;  %v146_v14 = vmul.f32 0.2, %v74_v59  ;;  %vm108_vm6 = vcmp.gt.f32.partialorder %v791_v2, 0.0 }
  0x4b   :  { %575 = vmatprep.subr.bf16.mxu0 %v574_v8  ;;  %v590_v16 = vpack.c.bf16 %v185_v12, %v181_v9  ;;  %vm112_vm7 = vcmp.gt.f32.partialorder %v76_v7, 0.0  ;;  %v144_v17 = vmul.f32 0.2, %v791_v2  ;;  %v148_v18 = vmul.f32 0.2, %v76_v7 }
  0x4c   :  { %v178_v20 = vsel %vm106_vm4, %v783_v55, %v142_v13  ;;  %v182_v21 = vsel %vm110_vm5, %v74_v59, %v146_v14  ;;  %vm115_vm8 = vcmp.gt.f32.partialorder %v79_v10, 0.0  ;;  %vm119_vm9 = vcmp.gt.f32.partialorder %v83_v11, 0.0 }
  0x4d   :  { %591 = vmatprep.subr.bf16.mxu1 %v590_v16  ;;  %v576_v23 = vpack.c.bf16 %v182_v21, %v178_v20  ;;  %v180_v24 = vsel %vm108_vm6, %v791_v2, %v144_v17  ;;  %v184_v25 = vsel %vm112_vm7, %v76_v7, %v148_v18  ;;  %v151_v26 = vmul.f32 0.2, %v79_v10 }
  0x4e   :  { %v592_v28 = vpack.c.bf16 %v184_v25, %v180_v24  ;;  %v155_v29 = vmul.f32 0.2, %v83_v11  ;;  %vm117_vm10 = vcmp.gt.f32.partialorder %v81_v15, 0.0  ;;  %vm121_vm11 = vcmp.gt.f32.partialorder %v85_v19, 0.0 }
  0x4f   :  { %577 = vmatpush1.bf16.msra.mxu0 %v576_v23  ;;  %v187_v31 = vsel %vm115_vm8, %v79_v10, %v151_v26  ;;  %v153_v32 = vmul.f32 0.2, %v81_v15  ;;  %v157_v33 = vmul.f32 0.2, %v85_v19  ;;  %vm114_vm12 = vcmp.gt.f32.partialorder %v78_v22, 0.0 }
  0x50   :  { %593 = vmatpush1.bf16.msra.mxu1 %v592_v28  ;;  %v191_v35 = vsel %vm119_vm9, %v83_v11, %v155_v29  ;;  %vm118_vm13 = vcmp.gt.f32.partialorder %v82_v27, 0.0  ;;  %v150_v36 = vmul.f32 0.2, %v78_v22  ;;  %v154_v37 = vmul.f32 0.2, %v82_v27 }
  0x51   :  { %v578_v39 = vpack.c.bf16 %v191_v35, %v187_v31  ;;  %v189_v40 = vsel %vm117_vm10, %v81_v15, %v153_v32  ;;  %v193_v41 = vsel %vm121_vm11, %v85_v19, %v157_v33  ;;  %vm116_vm14 = vcmp.gt.f32.partialorder %v80_v30, 0.0  ;;  %v385_v32 = vld [vmem:[#allocation7] sm:$0xff] }
  0x52   :  { %v594_v44 = vpack.c.bf16 %v193_v41, %v189_v40  ;;  %v186_v46 = vsel %vm114_vm12, %v78_v22, %v150_v36  ;;  %v190_v47 = vsel %vm118_vm13, %v82_v27, %v154_v37  ;;  %vm120_vm15 = vcmp.gt.f32.partialorder %v84_v34, 0.0 }
  0x53   :  { %579 = vmatprep.subr.bf16.mxu0 %v578_v39  ;;  %v580_v49 = vpack.c.bf16 %v190_v47, %v186_v46  ;;  %v152_v51 = vmul.f32 0.2, %v80_v30  ;;  %v156_v52 = vmul.f32 0.2, %v84_v34  ;;  %vm123_vm0 = vcmp.gt.f32.partialorder %v87_v38, 0.0 }
  0x54   :  { %595 = vmatprep.subr.bf16.mxu1 %v594_v44  ;;  %v159_v53 = vmul.f32 0.2, %v87_v38  ;;  %vm125_vm1 = vcmp.gt.f32.partialorder %v89_v42, 0.0  ;;  %v161_v54 = vmul.f32 0.2, %v89_v42  ;;  %vm122_vm2 = vcmp.gt.f32.partialorder %v86_v43, 0.0 }
  0x55   :  { %581 = vmatpush1.bf16.msra.mxu0 %v580_v49  ;;  %v188_v56 = vsel %vm116_vm14, %v80_v30, %v152_v51  ;;  %v192_v57 = vsel %vm120_vm15, %v84_v34, %v156_v52  ;;  %v158_v58 = vmul.f32 0.2, %v86_v43  ;;  %vm124_vm3 = vcmp.gt.f32.partialorder %v88_v48, 0.0 }
  0x56   :  { %v596_v59 = vpack.c.bf16 %v192_v57, %v188_v56  ;;  %v195_v60 = vsel %vm123_vm0, %v87_v38, %v159_v53  ;;  %v197_v61 = vsel %vm125_vm1, %v89_v42, %v161_v54  ;;  %v160_v62 = vmul.f32 0.2, %v88_v48 }
  0x57   :  { %223 = vmatprep.subr.mxu0 %v195_v60  ;;  %v194_v63 = vsel %vm122_vm2, %v86_v43, %v158_v58  ;;  %vm200_vm4 = vcmask 588800   ;;  %vm386_vm13 = vcmask 130048  }
  0x58   :  { %597 = vmatpush1.bf16.msra.mxu1 %v596_v59  ;;  %v196_v3 = vsel %vm124_vm3, %v88_v48, %v160_v62 }
  0x59   :  { %300 = vmatprep.subr.mxu1 %v197_v61  ;;  %224 = vmatpush1.msra.mxu0 %v194_v63 }
  0x5a   :  { %560 = vmatmul.mubr.msk.f32.vlgmr.msra.gmra.mrb[0].mxu0 %vm200_vm4, %v198_v1 }
  0x5b   :  { %277 = vmatprep.mubr.f32.mxu0 %v716_v0 }
  0x5c   :  { %301 = vmatpush1.msra.mxu1 %v196_v3 }
  0x5d   :  { %562 = vmatmul.mubr.msk.f32.vlgmr.msra.gmra.mrb[0].mxu1 %vm200_vm4, %v198_v1 }
  0x5e   :  { %354 = vmatprep.mubr.f32.mxu1 %v716_v0  ;;  %561 = vmatmul.mubr.msk.f32.gmra.mrb[2].mxu0 %vm200_vm4, %v199_v4 }
  0x5f   :  { %454 = vmatprep.mubr.f32.mxu0 %v716_v0 }
  0x61   :  { %563 = vmatmul.mubr.msk.f32.gmra.mrb[2].mxu1 %vm200_vm4, %v199_v4 }
  0x62   :  { %525 = vmatprep.mubr.f32.mxu1 %v716_v0 }
 0x12d   :  { %v273_v5 = vpop.f32.mrb[0].mxu0 }
 0x12e   :  { %v275_v6 = vpop.f32.mrb[1].mxu0  ;;  %v369_v7 = vmul.f32 0.2, %v273_v5  ;;  %vm361_vm5 = vcmp.gt.f32.partialorder %v273_v5, 0.0 }
 0x12f   :  { %v370_v11 = vmul.f32 0.2, %v275_v6  ;;  %vm362_vm8 = vcmp.gt.f32.partialorder %v275_v6, 0.0 }
 0x130   :  { %v350_v8 = vpop.f32.mrb[0].mxu1  ;;  %v377_v13 = vsel %vm361_vm5, %v273_v5, %v369_v7 }
 0x131   :  { %v352_v9 = vpop.f32.mrb[1].mxu1  ;;  %v279_v10 = vpop.f32.mrb[2].mxu0  ;;  %vm363_vm7 = vcmp.gt.f32.partialorder %v350_v8, 0.0  ;;  %v371_v14 = vmul.f32 0.2, %v350_v8  ;;  %v378_v22 = vsel %vm362_vm8, %v275_v6, %v370_v11 }
 0x132   :  { %vm365_vm6 = vcmp.gt.f32.partialorder %v279_v10, 0.0  ;;  %v373_v12 = vmul.f32 0.2, %v279_v10  ;;  %v281_v15 = vpop.f32.mrb[3].mxu0  ;;  %v372_v16 = vmul.f32 0.2, %v352_v9 }
 0x133   :  { %vm366_vm9 = vcmp.gt.f32.partialorder %v281_v15, 0.0  ;;  %v374_v0 = vmul.f32 0.2, %v281_v15  ;;  %vm364_vm10 = vcmp.gt.f32.partialorder %v352_v9, 0.0  ;;  %v379_v25 = vsel %vm363_vm7, %v350_v8, %v371_v14 }
 0x134   :  { %v381_v17 = vsel %vm365_vm6, %v279_v10, %v373_v12  ;;  %v356_v18 = vpop.f32.mrb[2].mxu1  ;;  %v380_v28 = vsel %vm364_vm10, %v352_v9, %v372_v16 }
 0x135   :  { %v600_v19 = vpack.c.bf16 %v381_v17, %v377_v13  ;;  %vm367_vm11 = vcmp.gt.f32.partialorder %v356_v18, 0.0  ;;  %v375_v20 = vmul.f32 0.2, %v356_v18  ;;  %v358_v21 = vpop.f32.mrb[3].mxu1  ;;  %v382_v23 = vsel %vm366_vm9, %v281_v15, %v374_v0 }
 0x136   :  { %vm368_vm12 = vcmp.gt.f32.partialorder %v358_v21, 0.0  ;;  %v376_v24 = vmul.f32 0.2, %v358_v21  ;;  %v598_v27 = vpack.c.bf16 %v382_v23, %v378_v22 }
 0x137   :  { %v383_v26 = vsel %vm367_vm11, %v356_v18, %v375_v20 }
 0x138   :  { %v604_v29 = vpack.c.bf16 %v383_v26, %v379_v25  ;;  %v384_v30 = vsel %vm368_vm12, %v358_v21, %v376_v24  ;;  %599 = vmatprep.subr.bf16.mxu0 %v598_v27 }
 0x139   :  { %v602_v31 = vpack.c.bf16 %v384_v30, %v380_v28  ;;  %601 = vmatpush1.bf16.msra.mxu0 %v600_v19 }
 0x13b   :  { %603 = vmatprep.subr.bf16.mxu1 %v602_v31 }
 0x13c   :  { %605 = vmatpush1.bf16.msra.mxu1 %v604_v29  ;;  %564 = vmatmul.mubr.msk.f32.vlgmr.msra.gmra.mrb[4].mxu0 %vm386_vm13, %v385_v32 }
 0x13f   :  { %565 = vmatmul.mubr.msk.f32.vlgmr.msra.gmra.mrb[4].mxu1 %vm386_vm13, %v385_v32 }
 0x20f   :  { %v456_v33 = vpop.f32.mrb[4].mxu0 }
 0x210   :  { %v536_v34 = vadd.f32 %v456_v33, %v783_v55  ;;  %v458_v35 = vpop.f32.mrb[5].mxu0 }
 0x211   :  { %v537_v37 = vadd.f32 %v458_v35, %v777_v45 }
 0x212   :  { %v527_v36 = vpop.f32.mrb[4].mxu1  ;;  %540 = vst [vmem:[#allocation8] sm:$0xff] %v536_v34 }
 0x213   :  { %v538_v38 = vadd.f32 %v527_v36, %v791_v2  ;;  %v529_v39 = vpop.f32.mrb[5].mxu1  ;;  %541 = vst [vmem:[#allocation8 + $0x8] sm:$0xff] %v537_v37 }
 0x214   :  { %v539_v40 = vadd.f32 %v529_v39, %v781_v50 }
 0x215   :  { %542 = vst [vmem:[#allocation8 + $0x10] sm:$0xff] %v538_v38 }
 0x216   :  { %543 = vst [vmem:[#allocation8 + $0x18] sm:$0xff] %v539_v40 }
 0x217   :  { %692 = shalt.err (!%p689_p0)
}
 0x218   :  { %s693_s27 = scalar_lea.hbm %s832_s3, 512 }
 0x219   :  { %p694_p1 = scmp.ne.s32.totalorder %s832_s3, %s693_s27  ;;  %p697_p2 = scmp.lt.u32.totalorder %s693_s27, %s832_s3 }
 0x21b   :  { %p699_p3 = pnand %p697_p2, %p694_p1 }
 0x21d   :  { %702 = shalt.err (!%p699_p3)
}
 0x21e   :  { %553 = dma.vmem_to_hbm [thread:$0]  %s551_s23, 512, %s832_s3, [#allocation4]  }
 0x21f   :  { %707 = dma.done.wait [#allocation4], 512  }
 0x220   :  { %708 = vsyncadd [#allocation4], 4294966784 }
 0x221   :  { %557 = vsyncpa [#allocation3], 1 }
 0x222   :  { %558 = vsyncpa [#allocation6], 1 }
 0x223   :  { %559 = vsyncpa [#allocation4], 1 }

</bundles_post_ra>
